<compile_context>
chip_gen: v7x
topology: tpu7x:2x2x1
jax: 0.10.0
libtpu: 0.0.40
codegen_flags: <defaults>
</compile_context>

<pallas_src>
import jax
import jax.numpy as jnp
from jax.experimental import pallas as pl
from jax.experimental.pallas import tpu as pltpu


def mlp_kernel(x_ref, w1_ref, b1_ref, w2_ref, b2_ref, w3_ref, b3_ref,
               w4_ref, b4_ref, w5_ref, b5_ref, o_ref):
    # 5 MXU matmuls (bf16 inputs, f32 accumulation) + bias-add + ReLU on the VPU.
    # x arrives f32; the bf16 cast is done here (hidden under the MXU push).
    # Intermediates are cast back to bf16 so vreg pressure stays low.
    x = x_ref[...].astype(jnp.bfloat16)
    h = jnp.dot(x, w1_ref[...], preferred_element_type=jnp.float32)
    h = jnp.maximum(h + b1_ref[...], 0.0).astype(jnp.bfloat16)
    h = jnp.dot(h, w2_ref[...], preferred_element_type=jnp.float32)
    h = jnp.maximum(h + b2_ref[...], 0.0).astype(jnp.bfloat16)
    h = jnp.dot(h, w3_ref[...], preferred_element_type=jnp.float32)
    h = jnp.maximum(h + b3_ref[...], 0.0).astype(jnp.bfloat16)
    h = jnp.dot(h, w4_ref[...], preferred_element_type=jnp.float32)
    h = jnp.maximum(h + b4_ref[...], 0.0).astype(jnp.bfloat16)
    out = jnp.dot(h, w5_ref[...], preferred_element_type=jnp.float32) + b5_ref[...]
    o_ref[...] = out.astype(o_ref.dtype)


def _default_tile_b(B):
    """Per-generation batch tile.

    v5e/v6e are single-TensorCore: one grid step for B<=256 (extra steps are
    pure ~0.35us/step overhead).  v7x has 2 TCs: split the batch into 2
    parallel grid steps.  Cap at 256 so the transient f32 activations stay at
    <=32 vregs (avoids spill; only raise if a bundle dump shows MXU-bound with
    low ld/st slot utilization).
    """
    try:
        kind = jax.devices()[0].device_kind.lower()
    except Exception:  # pragma: no cover - defensive; default single-TC path
        kind = ""
    dual_tc = "v7" in kind
    tile = pl.cdiv(B, 2) if dual_tc else B
    tile = min(tile, 256)
    if B >= 16:
        tile = 16 * pl.cdiv(tile, 16)   # bf16 sublane packing
    return min(tile, B)


def prepare_params(params):
    """One-time conversion: weights -> bf16 (MXU peak dtype), biases stay f32."""
    prepped = {}
    for i in range(1, 6):
        prepped[f"w{i}"] = params[f"w{i}"].astype(jnp.bfloat16)
        prepped[f"b{i}"] = params[f"b{i}"].astype(jnp.float32)
    return prepped


def behavior_cloning_forward(x, prepped, *, tile_b=None):
    """x: [B, input_size] float32.  prepped: output of prepare_params()."""
    B, in_size = x.shape
    hidden = prepped["w1"].shape[1]
    out_size = prepped["w5"].shape[1]

    if tile_b is None:
        tile_b = _default_tile_b(B)
    tile_b = min(tile_b, B)
    grid = (pl.cdiv(B, tile_b),)

    def full(shape):
        # Full-array block, grid-invariant index -> stays resident across grid.
        return pl.BlockSpec(shape, lambda i: (0,) * len(shape))

    in_specs = [
        pl.BlockSpec((tile_b, in_size), lambda i: (i, 0)),      # x tile (f32)
        full((in_size, hidden)), full((1, hidden)),             # w1, b1
        full((hidden, hidden)), full((1, hidden)),              # w2, b2
        full((hidden, hidden)), full((1, hidden)),              # w3, b3
        full((hidden, hidden)), full((1, hidden)),              # w4, b4
        full((hidden, out_size)), full((1, out_size)),          # w5, b5 (unpadded)
    ]
    # Output block last dim == full array dim (out_size), so no 128 padding
    # needed; the masked store on 8 lanes is cheap for this kernel.
    out_spec = pl.BlockSpec((tile_b, out_size), lambda i: (i, 0))

    return pl.pallas_call(
        mlp_kernel,
        out_shape=jax.ShapeDtypeStruct((B, out_size), jnp.float32),
        grid_spec=pltpu.PrefetchScalarGridSpec(
            num_scalar_prefetch=0,
            grid=grid,
            in_specs=in_specs,
            out_specs=out_spec,
        ),
        compiler_params=pltpu.CompilerParams(
            dimension_semantics=("parallel",)),
    )(x,
      prepped["w1"], prepped["b1"], prepped["w2"], prepped["b2"],
      prepped["w3"], prepped["b3"], prepped["w4"], prepped["b4"],
      prepped["w5"], prepped["b5"])


def init_params(key, input_size, output_size, hidden=128):
    """Deterministic synthetic init matching nn.Linear shapes (transposed)."""
    dims = [(input_size, hidden), (hidden, hidden), (hidden, hidden),
            (hidden, hidden), (hidden, output_size)]
    params = {}
    keys = jax.random.split(key, len(dims) * 2)
    for idx, (fan_in, fan_out) in enumerate(dims):
        bound = 1.0 / (fan_in ** 0.5)
        wk, bk = keys[2 * idx], keys[2 * idx + 1]
        params[f"w{idx+1}"] = jax.random.uniform(
            wk, (fan_in, fan_out), jnp.float32, -bound, bound)
        params[f"b{idx+1}"] = jax.random.uniform(
            bk, (1, fan_out), jnp.float32, -bound, bound)
    return params


def reference_forward(x, params):
    # Pure-JAX f32 reference (mirrors the PyTorch module).
    h = x
    for i in range(1, 5):
        h = jnp.maximum(h @ params[f"w{i}"] + params[f"b{i}"], 0.0)
    return h @ params["w5"] + params["b5"]


if __name__ == "__main__":
    key = jax.random.PRNGKey(0)
    k_param, k_x = jax.random.split(key)

    batch, input_size, output_size = 256, 32, 8
    params = init_params(k_param, input_size, output_size)
    prepped = prepare_params(params)          # one-time bf16 weight conversion
    x = jax.random.normal(k_x, (batch, input_size), jnp.float32)

    out = behavior_cloning_forward(x, prepped)
    out = jax.block_until_ready(out)

    ref = reference_forward(x, params)
    assert out.shape == (batch, output_size)
    # bf16 matmul inputs vs f32 reference -> loosened tolerance.
    assert jnp.allclose(out, ref, atol=5e-2, rtol=5e-2), \
        float(jnp.max(jnp.abs(out - ref)))

    print("KERNEL_OK")
</pallas_src>

<mosaic_0001>
module attributes {stable_mosaic.version = 11 : i64} {
  func.func @mlp_kernel(%arg0: i32, %arg1: memref<256x32xf32, #tpu.memory_space<vmem>>, %arg2: memref<32x128xbf16, #tpu.memory_space<vmem>>, %arg3: memref<1x128xf32, #tpu.memory_space<vmem>>, %arg4: memref<128x128xbf16, #tpu.memory_space<vmem>>, %arg5: memref<1x128xf32, #tpu.memory_space<vmem>>, %arg6: memref<128x128xbf16, #tpu.memory_space<vmem>>, %arg7: memref<1x128xf32, #tpu.memory_space<vmem>>, %arg8: memref<128x128xbf16, #tpu.memory_space<vmem>>, %arg9: memref<1x128xf32, #tpu.memory_space<vmem>>, %arg10: memref<128x8xbf16, #tpu.memory_space<vmem>>, %arg11: memref<1x8xf32, #tpu.memory_space<vmem>>, %arg12: memref<256x8xf32, #tpu.memory_space<vmem>>) attributes {dimension_semantics = [#tpu.dimension_semantics<parallel>], iteration_bounds = array<i64: 1>, scalar_prefetch = 0 : i64, scratch_operands = 0 : i64, tpu.core_type = #tpu.core_type<tc>, window_params = [{transform_indices = @transform_0, window_bounds = array<i64: 256, 32>}, {pipeline_mode = #tpu.pipeline_mode<synchronous>, transform_indices = @transform_1, window_bounds = array<i64: 32, 128>}, {pipeline_mode = #tpu.pipeline_mode<synchronous>, transform_indices = @transform_2, window_bounds = array<i64: 1, 128>}, {pipeline_mode = #tpu.pipeline_mode<synchronous>, transform_indices = @transform_3, window_bounds = array<i64: 128, 128>}, {pipeline_mode = #tpu.pipeline_mode<synchronous>, transform_indices = @transform_4, window_bounds = array<i64: 1, 128>}, {pipeline_mode = #tpu.pipeline_mode<synchronous>, transform_indices = @transform_5, window_bounds = array<i64: 128, 128>}, {pipeline_mode = #tpu.pipeline_mode<synchronous>, transform_indices = @transform_6, window_bounds = array<i64: 1, 128>}, {pipeline_mode = #tpu.pipeline_mode<synchronous>, transform_indices = @transform_7, window_bounds = array<i64: 128, 128>}, {pipeline_mode = #tpu.pipeline_mode<synchronous>, transform_indices = @transform_8, window_bounds = array<i64: 1, 128>}, {pipeline_mode = #tpu.pipeline_mode<synchronous>, transform_indices = @transform_9, window_bounds = array<i64: 128, 8>}, {pipeline_mode = #tpu.pipeline_mode<synchronous>, transform_indices = @transform_10, window_bounds = array<i64: 1, 8>}, {transform_indices = @transform_11, window_bounds = array<i64: 256, 8>}]} {
    %c0 = arith.constant 0 : index
    %c0_0 = arith.constant 0 : index
    %0 = vector.load %arg1[%c0, %c0_0] : memref<256x32xf32, #tpu.memory_space<vmem>>, vector<256x32xf32>
    %1 = arith.truncf %0 : vector<256x32xf32> to vector<256x32xbf16>
    %c0_1 = arith.constant 0 : index
    %c0_2 = arith.constant 0 : index
    %2 = vector.load %arg2[%c0_1, %c0_2] : memref<32x128xbf16, #tpu.memory_space<vmem>>, vector<32x128xbf16>
    %cst = arith.constant dense<0.000000e+00> : vector<256x128xf32>
    %3 = tpu.matmul %1, %2, %cst {dimension_numbers = #tpu.dot_dimension_numbers<[1], [0], [0], [1], [0, 0, 1, 1], [], []>} : vector<256x32xbf16>, vector<32x128xbf16>, vector<256x128xf32> -> vector<256x128xf32>
    %c0_3 = arith.constant 0 : index
    %c0_4 = arith.constant 0 : index
    %4 = vector.load %arg3[%c0_3, %c0_4] : memref<1x128xf32, #tpu.memory_space<vmem>>, vector<1x128xf32>
    %5 = vector.broadcast %4 : vector<1x128xf32> to vector<256x128xf32>
    %6 = arith.addf %3, %5 : vector<256x128xf32>
    %cst_5 = arith.constant 0.000000e+00 : f32
    %7 = vector.broadcast %cst_5 : f32 to vector<256x128xf32>
    %8 = arith.maximumf %6, %7 : vector<256x128xf32>
    %9 = arith.truncf %8 : vector<256x128xf32> to vector<256x128xbf16>
    %c0_6 = arith.constant 0 : index
    %c0_7 = arith.constant 0 : index
    %10 = vector.load %arg4[%c0_6, %c0_7] : memref<128x128xbf16, #tpu.memory_space<vmem>>, vector<128x128xbf16>
    %cst_8 = arith.constant dense<0.000000e+00> : vector<256x128xf32>
    %11 = tpu.matmul %9, %10, %cst_8 {dimension_numbers = #tpu.dot_dimension_numbers<[1], [0], [0], [1], [0, 0, 1, 1], [], []>} : vector<256x128xbf16>, vector<128x128xbf16>, vector<256x128xf32> -> vector<256x128xf32>
    %c0_9 = arith.constant 0 : index
    %c0_10 = arith.constant 0 : index
    %12 = vector.load %arg5[%c0_9, %c0_10] : memref<1x128xf32, #tpu.memory_space<vmem>>, vector<1x128xf32>
    %13 = vector.broadcast %12 : vector<1x128xf32> to vector<256x128xf32>
    %14 = arith.addf %11, %13 : vector<256x128xf32>
    %cst_11 = arith.constant 0.000000e+00 : f32
    %15 = vector.broadcast %cst_11 : f32 to vector<256x128xf32>
    %16 = arith.maximumf %14, %15 : vector<256x128xf32>
    %17 = arith.truncf %16 : vector<256x128xf32> to vector<256x128xbf16>
    %c0_12 = arith.constant 0 : index
    %c0_13 = arith.constant 0 : index
    %18 = vector.load %arg6[%c0_12, %c0_13] : memref<128x128xbf16, #tpu.memory_space<vmem>>, vector<128x128xbf16>
    %cst_14 = arith.constant dense<0.000000e+00> : vector<256x128xf32>
    %19 = tpu.matmul %17, %18, %cst_14 {dimension_numbers = #tpu.dot_dimension_numbers<[1], [0], [0], [1], [0, 0, 1, 1], [], []>} : vector<256x128xbf16>, vector<128x128xbf16>, vector<256x128xf32> -> vector<256x128xf32>
    %c0_15 = arith.constant 0 : index
    %c0_16 = arith.constant 0 : index
    %20 = vector.load %arg7[%c0_15, %c0_16] : memref<1x128xf32, #tpu.memory_space<vmem>>, vector<1x128xf32>
    %21 = vector.broadcast %20 : vector<1x128xf32> to vector<256x128xf32>
    %22 = arith.addf %19, %21 : vector<256x128xf32>
    %cst_17 = arith.constant 0.000000e+00 : f32
    %23 = vector.broadcast %cst_17 : f32 to vector<256x128xf32>
    %24 = arith.maximumf %22, %23 : vector<256x128xf32>
    %25 = arith.truncf %24 : vector<256x128xf32> to vector<256x128xbf16>
    %c0_18 = arith.constant 0 : index
    %c0_19 = arith.constant 0 : index
    %26 = vector.load %arg8[%c0_18, %c0_19] : memref<128x128xbf16, #tpu.memory_space<vmem>>, vector<128x128xbf16>
    %cst_20 = arith.constant dense<0.000000e+00> : vector<256x128xf32>
    %27 = tpu.matmul %25, %26, %cst_20 {dimension_numbers = #tpu.dot_dimension_numbers<[1], [0], [0], [1], [0, 0, 1, 1], [], []>} : vector<256x128xbf16>, vector<128x128xbf16>, vector<256x128xf32> -> vector<256x128xf32>
    %c0_21 = arith.constant 0 : index
    %c0_22 = arith.constant 0 : index
    %28 = vector.load %arg9[%c0_21, %c0_22] : memref<1x128xf32, #tpu.memory_space<vmem>>, vector<1x128xf32>
    %29 = vector.broadcast %28 : vector<1x128xf32> to vector<256x128xf32>
    %30 = arith.addf %27, %29 : vector<256x128xf32>
    %cst_23 = arith.constant 0.000000e+00 : f32
    %31 = vector.broadcast %cst_23 : f32 to vector<256x128xf32>
    %32 = arith.maximumf %30, %31 : vector<256x128xf32>
    %33 = arith.truncf %32 : vector<256x128xf32> to vector<256x128xbf16>
    %c0_24 = arith.constant 0 : index
    %c0_25 = arith.constant 0 : index
    %34 = vector.load %arg10[%c0_24, %c0_25] : memref<128x8xbf16, #tpu.memory_space<vmem>>, vector<128x8xbf16>
    %cst_26 = arith.constant dense<0.000000e+00> : vector<256x8xf32>
    %35 = tpu.matmul %33, %34, %cst_26 {dimension_numbers = #tpu.dot_dimension_numbers<[1], [0], [0], [1], [0, 0, 1, 1], [], []>} : vector<256x128xbf16>, vector<128x8xbf16>, vector<256x8xf32> -> vector<256x8xf32>
    %c0_27 = arith.constant 0 : index
    %c0_28 = arith.constant 0 : index
    %36 = vector.load %arg11[%c0_27, %c0_28] : memref<1x8xf32, #tpu.memory_space<vmem>>, vector<1x8xf32>
    %37 = vector.broadcast %36 : vector<1x8xf32> to vector<256x8xf32>
    %38 = arith.addf %35, %37 : vector<256x8xf32>
    %c0_29 = arith.constant 0 : index
    %c0_30 = arith.constant 0 : index
    %39 = vector.load %arg12[%c0_29, %c0_30] : memref<256x8xf32, #tpu.memory_space<vmem>>, vector<256x8xf32>
    tpu.vector_store %arg12[%c0_29, %c0_30], %38 {strides = array<i32>} : memref<256x8xf32, #tpu.memory_space<vmem>>, vector<256x8xf32>,
    return
  }
  func.func @transform_0(%arg0: i32) -> (i32, i32) {
    %c0_i32 = arith.constant 0 : i32
    %c0_i32_0 = arith.constant 0 : i32
    return %arg0, %c0_i32 : i32, i32
  }
  func.func @transform_1(%arg0: i32) -> (i32, i32) {
    %c0_i32 = arith.constant 0 : i32
    %c0_i32_0 = arith.constant 0 : i32
    %c0_i32_1 = arith.constant 0 : i32
    return %c0_i32, %c0_i32_0 : i32, i32
  }
  func.func @transform_2(%arg0: i32) -> (i32, i32) {
    %c0_i32 = arith.constant 0 : i32
    %c0_i32_0 = arith.constant 0 : i32
    %c0_i32_1 = arith.constant 0 : i32
    return %c0_i32, %c0_i32_0 : i32, i32
  }
  func.func @transform_3(%arg0: i32) -> (i32, i32) {
    %c0_i32 = arith.constant 0 : i32
    %c0_i32_0 = arith.constant 0 : i32
    %c0_i32_1 = arith.constant 0 : i32
    return %c0_i32, %c0_i32_0 : i32, i32
  }
  func.func @transform_4(%arg0: i32) -> (i32, i32) {
    %c0_i32 = arith.constant 0 : i32
    %c0_i32_0 = arith.constant 0 : i32
    %c0_i32_1 = arith.constant 0 : i32
    return %c0_i32, %c0_i32_0 : i32, i32
  }
  func.func @transform_5(%arg0: i32) -> (i32, i32) {
    %c0_i32 = arith.constant 0 : i32
    %c0_i32_0 = arith.constant 0 : i32
    %c0_i32_1 = arith.constant 0 : i32
    return %c0_i32, %c0_i32_0 : i32, i32
  }
  func.func @transform_6(%arg0: i32) -> (i32, i32) {
    %c0_i32 = arith.constant 0 : i32
    %c0_i32_0 = arith.constant 0 : i32
    %c0_i32_1 = arith.constant 0 : i32
    return %c0_i32, %c0_i32_0 : i32, i32
  }
  func.func @transform_7(%arg0: i32) -> (i32, i32) {
    %c0_i32 = arith.constant 0 : i32
    %c0_i32_0 = arith.constant 0 : i32
    %c0_i32_1 = arith.constant 0 : i32
    return %c0_i32, %c0_i32_0 : i32, i32
  }
  func.func @transform_8(%arg0: i32) -> (i32, i32) {
    %c0_i32 = arith.constant 0 : i32
    %c0_i32_0 = arith.constant 0 : i32
    %c0_i32_1 = arith.constant 0 : i32
    return %c0_i32, %c0_i32_0 : i32, i32
  }
  func.func @transform_9(%arg0: i32) -> (i32, i32) {
    %c0_i32 = arith.constant 0 : i32
    %c0_i32_0 = arith.constant 0 : i32
    %c0_i32_1 = arith.constant 0 : i32
    return %c0_i32, %c0_i32_0 : i32, i32
  }
  func.func @transform_10(%arg0: i32) -> (i32, i32) {
    %c0_i32 = arith.constant 0 : i32
    %c0_i32_0 = arith.constant 0 : i32
    %c0_i32_1 = arith.constant 0 : i32
    return %c0_i32, %c0_i32_0 : i32, i32
  }
  func.func @transform_11(%arg0: i32) -> (i32, i32) {
    %c0_i32 = arith.constant 0 : i32
    %c0_i32_0 = arith.constant 0 : i32
    return %arg0, %c0_i32 : i32, i32
  }
}

</mosaic_0001>

<bundles_post_ra>
// kernel: tpu_custom_call.1
= control target key start
LH: loop header
LB: loop body
LE: loop exit
PB: predicated region body
PF: predicated region fallthrough
CT: control target
= control target key end

     0   :  { %vm110_vm0 = vcmask 261120   ;;  %vm1440_vm1 = vcmask 64512   ;;  %s2508_s1 = inlined_call_operand.vmem [shape: bf16[32,128], index: 1, kind: input, shape index: {}]   ;;  %s2509_s0 = inlined_call_operand.vmem [shape: f32[256,32], index: 0, kind: input, shape index: {}]   ;;  %s2510_s3 = inlined_call_operand.vmem [shape: bf16[128,128], index: 3, kind: input, shape index: {}]   ;;  %s2511_s5 = inlined_call_operand.vmem [shape: bf16[128,128], index: 5, kind: input, shape index: {}]   ;;  %s2512_s2 = inlined_call_operand.vmem [shape: f32[1,128], index: 2, kind: input, shape index: {}]   ;;  %s2513_s7 = inlined_call_operand.vmem [shape: bf16[128,128], index: 7, kind: input, shape index: {}]   ;;  %s2514_s4 = inlined_call_operand.vmem [shape: f32[1,128], index: 4, kind: input, shape index: {}]   ;;  %s2515_s9 = inlined_call_operand.vmem [shape: bf16[128,8], index: 9, kind: input, shape index: {}]   ;;  %s2516_s6 = inlined_call_operand.vmem [shape: f32[1,128], index: 6, kind: input, shape index: {}]   ;;  %s2517_s8 = inlined_call_operand.vmem [shape: f32[1,128], index: 8, kind: input, shape index: {}]   ;;  %s2518_s10 = inlined_call_operand.vmem [shape: f32[1,8], index: 10, kind: input, shape index: {}]   ;;  %s2519_s11 = inlined_call_operand.vmem [shape: f32[256,8], index: 11, kind: output, shape index: {}]  }
   0x1   :  { %v1878_v0 = vld [vmem:[%s2508_s1] sm:$0xff]   ;;  %v1879_v1 = vld [vmem:[%s2508_s1 + $0x8] sm:$0xff]   ;;  %v41_v5 = vld [vmem:[%s2509_s0 + $0x10] sm:$0xff] }
   0x2   :  { %1646 = vmatprep.subr.bf16.mxu0 %v1878_v0  ;;  %v39_v2 = vld [vmem:[%s2509_s0] sm:$0xff]  ;;  %v40_v3 = vld [vmem:[%s2509_s0 + $0x8] sm:$0xff]  ;;  %1874 = vmatprep.subr.bf16.mxu1 %v1878_v0  ;;  %v42_v6 = vld [vmem:[%s2509_s0 + $0x18] sm:$0xff] }
   0x3   :  { %1647 = vmatpush3.bf16.msra.mxu0 %v1878_v0  ;;  %v71_v4 = vpack.c.bf16 %v40_v3, %v39_v2  ;;  %1876 = vmatpush3.bf16.msra.mxu1 %v1878_v0  ;;  %v43_v7 = vld [vmem:[%s2509_s0 + $0x20] sm:$0xff]  ;;  %v44_v8 = vld [vmem:[%s2509_s0 + $0x28] sm:$0xff]  ;;  %v72_v9 = vpack.c.bf16 %v42_v6, %v41_v5  ;;  %v57_v14 = vld [vmem:[%s2509_s0 + $0x90] sm:$0xff] }
   0x4   :  { %1648 = vmatprep.subr.bf16.mxu0 %v1879_v1  ;;  %1875 = vmatprep.subr.bf16.mxu1 %v1879_v1  ;;  %v73_v10 = vpack.c.bf16 %v44_v8, %v43_v7  ;;  %v55_v11 = vld [vmem:[%s2509_s0 + $0x80] sm:$0xff]  ;;  %v56_v12 = vld [vmem:[%s2509_s0 + $0x88] sm:$0xff]  ;;  %v58_v15 = vld [vmem:[%s2509_s0 + $0x98] sm:$0xff] }
   0x5   :  { %1650 = vmatprep.mubr.msk.bf16.mxu0 %vm110_vm0, %v71_v4  ;;  %v79_v13 = vpack.c.bf16 %v56_v12, %v55_v11  ;;  %v59_v16 = vld [vmem:[%s2509_s0 + $0xa0] sm:$0xff]  ;;  %v80_v17 = vpack.c.bf16 %v58_v15, %v57_v14  ;;  %v60_v18 = vld [vmem:[%s2509_s0 + $0xa8] sm:$0xff]  ;;  %v45_v19 = vld [vmem:[%s2509_s0 + $0x30] sm:$0xff] }
   0x6   :  { %v46_v20 = vld [vmem:[%s2509_s0 + $0x38] sm:$0xff]  ;;  %v47_v21 = vld [vmem:[%s2509_s0 + $0x40] sm:$0xff]  ;;  %v81_v22 = vpack.c.bf16 %v60_v18, %v59_v16  ;;  %v48_v23 = vld [vmem:[%s2509_s0 + $0x48] sm:$0xff] }
   0x7   :  { %1649 = vmatpush3.bf16.msra.mxu0 %v1879_v1  ;;  %1877 = vmatpush3.bf16.msra.mxu1 %v1879_v1  ;;  %v61_v24 = vld [vmem:[%s2509_s0 + $0xb0] sm:$0xff]  ;;  %v62_v25 = vld [vmem:[%s2509_s0 + $0xb8] sm:$0xff]  ;;  %v63_v26 = vld [vmem:[%s2509_s0 + $0xc0] sm:$0xff]  ;;  %v74_v29 = vpack.c.bf16 %v46_v20, %v45_v19  ;;  %v75_v31 = vpack.c.bf16 %v48_v23, %v47_v21 }
   0x8   :  { %1666 = vmatprep.mubr.msk.bf16.mxu1 %vm110_vm0, %v79_v13  ;;  %v64_v27 = vld [vmem:[%s2509_s0 + $0xc8] sm:$0xff]  ;;  %v1880_v28 = vld [vmem:[%s2510_s3] sm:$0xff]   ;;  %v82_v32 = vpack.c.bf16 %v62_v25, %v61_v24  ;;  %v49_v34 = vld [vmem:[%s2509_s0 + $0x50] sm:$0xff] }
   0x9   :  { %v1881_v30 = vld [vmem:[%s2510_s3 + $0x8] sm:$0xff]   ;;  %1682 = vmatprep.subr.bf16.mxu1 %v1880_v28  ;;  %v83_v33 = vpack.c.bf16 %v64_v27, %v63_v26  ;;  %v50_v35 = vld [vmem:[%s2509_s0 + $0x58] sm:$0xff]  ;;  %v1882_v36 = vld [vmem:[%s2510_s3 + $0x10] sm:$0xff]  }
   0xa   :  { %1651 = vmatmul.mubr.msk.bf16.vlgmr.msra.gmra.mrb[0].mxu0 %vm110_vm0, %v72_v9  ;;  %1667 = vmatmul.mubr.msk.bf16.vlgmr.msra.gmra.mrb[0].mxu1 %vm110_vm0, %v80_v17  ;;  %v51_v37 = vld [vmem:[%s2509_s0 + $0x60] sm:$0xff]  ;;  %v52_v38 = vld [vmem:[%s2509_s0 + $0x68] sm:$0xff]  ;;  %v65_v39 = vld [vmem:[%s2509_s0 + $0xd0] sm:$0xff]  ;;  %v76_v44 = vpack.c.bf16 %v50_v35, %v49_v34 }
   0xb   :  { %1654 = vmatprep.mubr.msk.bf16.mxu0 %vm110_vm0, %v73_v10  ;;  %1670 = vmatprep.mubr.msk.bf16.mxu1 %vm110_vm0, %v81_v22  ;;  %v66_v40 = vld [vmem:[%s2509_s0 + $0xd8] sm:$0xff]  ;;  %v67_v41 = vld [vmem:[%s2509_s0 + $0xe0] sm:$0xff]  ;;  %v68_v42 = vld [vmem:[%s2509_s0 + $0xe8] sm:$0xff]  ;;  %v77_v45 = vpack.c.bf16 %v52_v38, %v51_v37 }
   0xc   :  { %1683 = vmatpush3.bf16.msra.mxu1 %v1880_v28  ;;  %v1883_v43 = vld [vmem:[%s2510_s3 + $0x18] sm:$0xff]   ;;  %v84_v46 = vpack.c.bf16 %v66_v40, %v65_v39  ;;  %v85_v47 = vpack.c.bf16 %v68_v42, %v67_v41  ;;  %v1884_v48 = vld [vmem:[%s2510_s3 + $0x20] sm:$0xff]   ;;  %v53_v49 = vld [vmem:[%s2509_s0 + $0x70] sm:$0xff] }
   0xd   :  { %1684 = vmatprep.subr.bf16.mxu1 %v1881_v30  ;;  %v54_v50 = vld [vmem:[%s2509_s0 + $0x78] sm:$0xff]  ;;  %v69_v51 = vld [vmem:[%s2509_s0 + $0xf0] sm:$0xff]  ;;  %v1885_v53 = vld [vmem:[%s2510_s3 + $0x28] sm:$0xff]  }
   0xe   :  { %v70_v52 = vld [vmem:[%s2509_s0 + $0xf8] sm:$0xff]  ;;  %v78_v54 = vpack.c.bf16 %v54_v50, %v53_v49  ;;  %v1886_v56 = vld [vmem:[%s2510_s3 + $0x30] sm:$0xff]   ;;  %v1888_v58 = vld [vmem:[%s2511_s5] sm:$0xff]  }
   0xf   :  { %v86_v55 = vpack.c.bf16 %v70_v52, %v69_v51  ;;  %v1887_v57 = vld [vmem:[%s2510_s3 + $0x38] sm:$0xff]   ;;  %v1889_v59 = vld [vmem:[%s2511_s5 + $0x8] sm:$0xff]   ;;  %1730 = vmatprep.subr.bf16.mxu0 %v1888_v58  ;;  %v1890_v60 = vld [vmem:[%s2511_s5 + $0x10] sm:$0xff]  }
  0x10   :  { %1685 = vmatpush3.bf16.msra.mxu1 %v1881_v30  ;;  %1731 = vmatpush3.bf16.msra.mxu0 %v1888_v58  ;;  %v1891_v61 = vld [vmem:[%s2511_s5 + $0x18] sm:$0xff]   ;;  %v1892_v62 = vld [vmem:[%s2511_s5 + $0x20] sm:$0xff]   ;;  %v1893_v63 = vld [vmem:[%s2511_s5 + $0x28] sm:$0xff]  }
  0x11   :  { %1686 = vmatprep.subr.bf16.mxu1 %v1882_v36  ;;  %1732 = vmatprep.subr.bf16.mxu0 %v1889_v59  ;;  %v2135_v0 = vld [vmem:[%s2512_s2] ss:$0 sm:$0xff] }
  0x12   :  { %1655 = vmatmul.mubr.msk.bf16.gmra.mrb[4].mxu0 %vm110_vm0, %v74_v29  ;;  %1671 = vmatmul.mubr.msk.bf16.gmra.mrb[4].mxu1 %vm110_vm0, %v82_v32 }
  0x13   :  { %1658 = vmatprep.mubr.msk.bf16.mxu0 %vm110_vm0, %v75_v31  ;;  %1674 = vmatprep.mubr.msk.bf16.mxu1 %vm110_vm0, %v83_v33 }
  0x14   :  { %1687 = vmatpush3.bf16.msra.mxu1 %v1882_v36  ;;  %1733 = vmatpush3.bf16.msra.mxu0 %v1889_v59 }
  0x15   :  { %1688 = vmatprep.subr.bf16.mxu1 %v1883_v43  ;;  %1734 = vmatprep.subr.bf16.mxu0 %v1890_v60 }
  0x18   :  { %1689 = vmatpush3.bf16.msra.mxu1 %v1883_v43  ;;  %1735 = vmatpush3.bf16.msra.mxu0 %v1890_v60 }
  0x19   :  { %1690 = vmatprep.subr.bf16.mxu1 %v1884_v48  ;;  %1736 = vmatprep.subr.bf16.mxu0 %v1891_v61 }
  0x1a   :  { %1659 = vmatmul.mubr.msk.bf16.gmra.mrb[8].mxu0 %vm110_vm0, %v76_v44  ;;  %1675 = vmatmul.mubr.msk.bf16.gmra.mrb[8].mxu1 %vm110_vm0, %v84_v46 }
  0x1b   :  { %1662 = vmatprep.mubr.msk.bf16.mxu0 %vm110_vm0, %v77_v45  ;;  %1678 = vmatprep.mubr.msk.bf16.mxu1 %vm110_vm0, %v85_v47 }
  0x1c   :  { %1691 = vmatpush3.bf16.msra.mxu1 %v1884_v48  ;;  %1737 = vmatpush3.bf16.msra.mxu0 %v1891_v61 }
  0x1d   :  { %1692 = vmatprep.subr.bf16.mxu1 %v1885_v53  ;;  %1738 = vmatprep.subr.bf16.mxu0 %v1892_v62 }
  0x20   :  { %1693 = vmatpush3.bf16.msra.mxu1 %v1885_v53  ;;  %1739 = vmatpush3.bf16.msra.mxu0 %v1892_v62 }
  0x21   :  { %1694 = vmatprep.subr.bf16.mxu1 %v1886_v56  ;;  %1740 = vmatprep.subr.bf16.mxu0 %v1893_v63 }
  0x22   :  { %1663 = vmatmul.mubr.msk.bf16.gmra.mrb[12].mxu0 %vm110_vm0, %v78_v54  ;;  %1679 = vmatmul.mubr.msk.bf16.gmra.mrb[12].mxu1 %vm110_vm0, %v86_v55 }
  0x24   :  { %1695 = vmatpush3.bf16.msra.mxu1 %v1886_v56  ;;  %1741 = vmatpush3.bf16.msra.mxu0 %v1893_v63 }
  0x25   :  { %1696 = vmatprep.subr.bf16.mxu1 %v1887_v57 }
  0x28   :  { %1697 = vmatpush3.bf16.msra.mxu1 %v1887_v57 }
  0xdd   :  { %v1652_v1 = vpop.f32.mrb[0].mxu0  ;;  %v1668_v4 = vpop.f32.mrb[0].mxu1 }
  0xde   :  { %v202_v2 = vadd.f32 %v1652_v1, %v2135_v0  ;;  %v193_v3 = vpop.f32.mrb[1].mxu0  ;;  %v266_v7 = vadd.f32 %v1668_v4, %v2135_v0  ;;  %v257_v8 = vpop.f32.mrb[1].mxu1 }
  0xdf   :  { %v194_v5 = vadd.f32 %v2135_v0, %v193_v3  ;;  %v1653_v6 = vpop.f32.mrb[2].mxu0  ;;  %v258_v11 = vadd.f32 %v2135_v0, %v257_v8  ;;  %v1669_v12 = vpop.f32.mrb[2].mxu1 }
  0xe0   :  { %v205_v9 = vadd.f32 %v1653_v6, %v2135_v0  ;;  %v196_v10 = vpop.f32.mrb[3].mxu0  ;;  %v338_v14 = vmax.f32 %v266_v7, 0.0  ;;  %v269_v15 = vadd.f32 %v1669_v12, %v2135_v0  ;;  %v260_v16 = vpop.f32.mrb[3].mxu1  ;;  %v322_v17 = vmax.f32 %v202_v2, 0.0 }
  0xe1   :  { %v197_v13 = vadd.f32 %v2135_v0, %v196_v10  ;;  %v336_v19 = vmax.f32 %v258_v11, 0.0  ;;  %v261_v20 = vadd.f32 %v2135_v0, %v260_v16  ;;  %v320_v21 = vmax.f32 %v194_v5, 0.0 }
  0xe2   :  { %v323_v18 = vmax.f32 %v205_v9, 0.0  ;;  %v339_v23 = vmax.f32 %v269_v15, 0.0 }
  0xe3   :  { %v321_v22 = vmax.f32 %v197_v13, 0.0  ;;  %v337_v25 = vmax.f32 %v261_v20, 0.0 }
  0xe4   :  { %v353_v24 = vpack.c.bf16 %v323_v18, %v322_v17  ;;  %v2145_v28 = vpack.c.bf16 %v339_v23, %v338_v14 }
  0xe5   :  { %v352_v26 = vpack.c.bf16 %v321_v22, %v320_v21  ;;  %v1656_v27 = vpop.f32.mrb[4].mxu0  ;;  %v2148_v31 = vpack.c.bf16 %v337_v25, %v336_v19  ;;  %v1672_v32 = vpop.f32.mrb[4].mxu1 }
  0xe6   :  { %v218_v29 = vadd.f32 %v1656_v27, %v2135_v0  ;;  %v209_v30 = vpop.f32.mrb[5].mxu0  ;;  %v282_v35 = vadd.f32 %v1672_v32, %v2135_v0  ;;  %v273_v36 = vpop.f32.mrb[5].mxu1 }
  0xe7   :  { %v210_v33 = vadd.f32 %v2135_v0, %v209_v30  ;;  %v1657_v34 = vpop.f32.mrb[6].mxu0  ;;  %1698 = vmatprep.mubr.bf16.mxu1 %v352_v26  ;;  %v274_v39 = vadd.f32 %v2135_v0, %v273_v36  ;;  %v1673_v40 = vpop.f32.mrb[6].mxu1 }
  0xe8   :  { %v221_v37 = vadd.f32 %v1657_v34, %v2135_v0  ;;  %v212_v38 = vpop.f32.mrb[7].mxu0  ;;  %1699 = vmatmul.mubr.bf16.vlgmr.msra.gmra.mrb[16].mxu1 %v353_v24  ;;  %v342_v42 = vmax.f32 %v282_v35, 0.0  ;;  %v285_v43 = vadd.f32 %v1673_v40, %v2135_v0  ;;  %v276_v44 = vpop.f32.mrb[7].mxu1  ;;  %v326_v45 = vmax.f32 %v218_v29, 0.0 }
  0xe9   :  { %v213_v41 = vadd.f32 %v2135_v0, %v212_v38  ;;  %v340_v47 = vmax.f32 %v274_v39, 0.0  ;;  %v277_v48 = vadd.f32 %v2135_v0, %v276_v44  ;;  %v324_v49 = vmax.f32 %v210_v33, 0.0 }
  0xea   :  { %v327_v46 = vmax.f32 %v221_v37, 0.0  ;;  %v343_v51 = vmax.f32 %v285_v43, 0.0 }
  0xeb   :  { %v325_v50 = vmax.f32 %v213_v41, 0.0  ;;  %v341_v53 = vmax.f32 %v277_v48, 0.0 }
  0xec   :  { %v355_v52 = vpack.c.bf16 %v327_v46, %v326_v45  ;;  %v2157_v56 = vpack.c.bf16 %v343_v51, %v342_v42 }
  0xed   :  { %v354_v54 = vpack.c.bf16 %v325_v50, %v324_v49  ;;  %v1660_v55 = vpop.f32.mrb[8].mxu0  ;;  %v362_v59 = vpack.c.bf16 %v341_v53, %v340_v47  ;;  %v1676_v60 = vpop.f32.mrb[8].mxu1  ;;  %v1898_v53 = vld [vmem:[%s2513_s7 + $0x10] sm:$0xff]  }
  0xee   :  { %v234_v57 = vadd.f32 %v1660_v55, %v2135_v0  ;;  %v225_v58 = vpop.f32.mrb[9].mxu0  ;;  %v298_v63 = vadd.f32 %v1676_v60, %v2135_v0  ;;  %v289_v1 = vpop.f32.mrb[9].mxu1  ;;  %v1900_v55 = vld [vmem:[%s2513_s7 + $0x20] sm:$0xff]  }
  0xef   :  { %v226_v61 = vadd.f32 %v2135_v0, %v225_v58  ;;  %v1661_v62 = vpop.f32.mrb[10].mxu0  ;;  %1702 = vmatprep.mubr.bf16.mxu1 %v354_v54  ;;  %v290_v4 = vadd.f32 %v2135_v0, %v289_v1  ;;  %v1677_v5 = vpop.f32.mrb[10].mxu1  ;;  %v1899_v54 = vld [vmem:[%s2513_s7 + $0x18] sm:$0xff]   ;;  %v2208_v58 = vld [vmem:[%s2514_s4] ss:$0 sm:$0xff] }
  0xf0   :  { %v237_v2 = vadd.f32 %v1661_v62, %v2135_v0  ;;  %v228_v3 = vpop.f32.mrb[11].mxu0  ;;  %1703 = vmatmul.mubr.bf16.gmra.mrb[20].mxu1 %v355_v52  ;;  %v346_v7 = vmax.f32 %v298_v63, 0.0  ;;  %v301_v8 = vadd.f32 %v1677_v5, %v2135_v0  ;;  %v292_v9 = vpop.f32.mrb[11].mxu1  ;;  %v330_v10 = vmax.f32 %v234_v57, 0.0  ;;  %v1895_v52 = vld [vmem:[%s2511_s5 + $0x38] sm:$0xff]   ;;  %v1902_v57 = vld [vmem:[%s2513_s7 + $0x30] sm:$0xff]  }
  0xf1   :  { %v229_v6 = vadd.f32 %v2135_v0, %v228_v3  ;;  %v344_v12 = vmax.f32 %v290_v4, 0.0  ;;  %v293_v13 = vadd.f32 %v2135_v0, %v292_v9  ;;  %v328_v14 = vmax.f32 %v226_v61, 0.0 }
  0xf2   :  { %v331_v11 = vmax.f32 %v237_v2, 0.0  ;;  %v347_v16 = vmax.f32 %v301_v8, 0.0 }
  0xf3   :  { %v329_v15 = vmax.f32 %v229_v6, 0.0  ;;  %v345_v18 = vmax.f32 %v293_v13, 0.0 }
  0xf4   :  { %v357_v17 = vpack.c.bf16 %v331_v11, %v330_v10  ;;  %v365_v21 = vpack.c.bf16 %v347_v16, %v346_v7 }
  0xf5   :  { %v356_v19 = vpack.c.bf16 %v329_v15, %v328_v14  ;;  %v1664_v20 = vpop.f32.mrb[12].mxu0  ;;  %v364_v24 = vpack.c.bf16 %v345_v18, %v344_v12  ;;  %v1680_v25 = vpop.f32.mrb[12].mxu1 }
  0xf6   :  { %v250_v22 = vadd.f32 %v1664_v20, %v2135_v0  ;;  %v241_v23 = vpop.f32.mrb[13].mxu0  ;;  %v314_v29 = vadd.f32 %v1680_v25, %v2135_v0  ;;  %v305_v30 = vpop.f32.mrb[13].mxu1 }
  0xf7   :  { %v242_v26 = vadd.f32 %v2135_v0, %v241_v23  ;;  %v1665_v27 = vpop.f32.mrb[14].mxu0  ;;  %1706 = vmatprep.mubr.bf16.mxu1 %v356_v19  ;;  %v306_v34 = vadd.f32 %v2135_v0, %v305_v30  ;;  %v1681_v35 = vpop.f32.mrb[14].mxu1 }
  0xf8   :  { %v253_v32 = vadd.f32 %v1665_v27, %v2135_v0  ;;  %v244_v33 = vpop.f32.mrb[15].mxu0  ;;  %1707 = vmatmul.mubr.bf16.gmra.mrb[24].mxu1 %v357_v17  ;;  %v350_v37 = vmax.f32 %v314_v29, 0.0  ;;  %v317_v38 = vadd.f32 %v1681_v35, %v2135_v0  ;;  %v308_v39 = vpop.f32.mrb[15].mxu1  ;;  %v334_v40 = vmax.f32 %v250_v22, 0.0 }
  0xf9   :  { %v245_v36 = vadd.f32 %v2135_v0, %v244_v33  ;;  %v348_v42 = vmax.f32 %v306_v34, 0.0  ;;  %v309_v43 = vadd.f32 %v2135_v0, %v308_v39  ;;  %v332_v44 = vmax.f32 %v242_v26, 0.0  ;;  %v1894_v0 = vld [vmem:[%s2511_s5 + $0x30] sm:$0xff]  }
  0xfa   :  { %v335_v41 = vmax.f32 %v253_v32, 0.0  ;;  %v351_v46 = vmax.f32 %v317_v38, 0.0  ;;  %1742 = vmatprep.subr.bf16.mxu0 %v1894_v0 }
  0xfb   :  { %v333_v45 = vmax.f32 %v245_v36, 0.0  ;;  %v349_v48 = vmax.f32 %v309_v43, 0.0  ;;  %1743 = vmatpush3.bf16.msra.mxu0 %v1894_v0 }
  0xfc   :  { %v359_v47 = vpack.c.bf16 %v335_v41, %v334_v40  ;;  %v367_v50 = vpack.c.bf16 %v351_v46, %v350_v37  ;;  %1744 = vmatprep.subr.bf16.mxu0 %v1895_v52 }
  0xfd   :  { %v358_v49 = vpack.c.bf16 %v333_v45, %v332_v44  ;;  %v366_v51 = vpack.c.bf16 %v349_v48, %v348_v42 }
  0xff   :  { %1710 = vmatprep.mubr.bf16.mxu1 %v358_v49  ;;  %1745 = vmatpush3.bf16.msra.mxu0 %v1895_v52 }
 0x100   :  { %1711 = vmatmul.mubr.bf16.gmra.mrb[28].mxu1 %v359_v47 }
 0x101   :  { %1714 = vmatprep.mubr.bf16.mxu1 %v2148_v31  ;;  %v1897_v31 = vld [vmem:[%s2513_s7 + $0x8] sm:$0xff]  }
 0x108   :  { %1715 = vmatmul.mubr.bf16.gmra.mrb[32].mxu1 %v2145_v28  ;;  %v1896_v28 = vld [vmem:[%s2513_s7] sm:$0xff]  }
 0x109   :  { %1718 = vmatprep.mubr.bf16.mxu1 %v362_v59  ;;  %1778 = vmatprep.subr.bf16.mxu1 %v1896_v28 }
 0x10a   :  { %1779 = vmatpush3.bf16.msra.mxu1 %v1896_v28 }
 0x10b   :  { %1780 = vmatprep.subr.bf16.mxu1 %v1897_v31 }
 0x10e   :  { %1781 = vmatpush3.bf16.msra.mxu1 %v1897_v31 }
 0x10f   :  { %1782 = vmatprep.subr.bf16.mxu1 %v1898_v53 }
 0x110   :  { %1719 = vmatmul.mubr.bf16.gmra.mrb[36].mxu1 %v2157_v56  ;;  %v1901_v56 = vld [vmem:[%s2513_s7 + $0x28] sm:$0xff]  }
 0x111   :  { %1722 = vmatprep.mubr.bf16.mxu1 %v364_v24 }
 0x112   :  { %1783 = vmatpush3.bf16.msra.mxu1 %v1898_v53 }
 0x113   :  { %1784 = vmatprep.subr.bf16.mxu1 %v1899_v54 }
 0x116   :  { %1785 = vmatpush3.bf16.msra.mxu1 %v1899_v54 }
 0x117   :  { %1786 = vmatprep.subr.bf16.mxu1 %v1900_v55 }
 0x118   :  { %1723 = vmatmul.mubr.bf16.gmra.mrb[40].mxu1 %v365_v21 }
 0x119   :  { %1726 = vmatprep.mubr.bf16.mxu1 %v366_v51 }
 0x11a   :  { %1787 = vmatpush3.bf16.msra.mxu1 %v1900_v55 }
 0x11b   :  { %1788 = vmatprep.subr.bf16.mxu1 %v1901_v56 }
 0x11e   :  { %1789 = vmatpush3.bf16.msra.mxu1 %v1901_v56 }
 0x11f   :  { %1790 = vmatprep.subr.bf16.mxu1 %v1902_v57 }
 0x120   :  { %1727 = vmatmul.mubr.bf16.gmra.mrb[44].mxu1 %v367_v50 }
 0x122   :  { %1791 = vmatpush3.bf16.msra.mxu1 %v1902_v57 }
 0x1bb   :  { %v1700_v59 = vpop.f32.mrb[16].mxu1 }
 0x1bc   :  { %v482_v60 = vadd.f32 %v1700_v59, %v2208_v58  ;;  %v473_v61 = vpop.f32.mrb[17].mxu1 }
 0x1bd   :  { %v474_v62 = vadd.f32 %v2208_v58, %v473_v61  ;;  %v1701_v63 = vpop.f32.mrb[18].mxu1 }
 0x1be   :  { %v485_v1 = vadd.f32 %v1701_v63, %v2208_v58  ;;  %v476_v2 = vpop.f32.mrb[19].mxu1  ;;  %v602_v4 = vmax.f32 %v482_v60, 0.0 }
 0x1bf   :  { %v477_v3 = vadd.f32 %v2208_v58, %v476_v2  ;;  %v600_v6 = vmax.f32 %v474_v62, 0.0 }
 0x1c0   :  { %v603_v5 = vmax.f32 %v485_v1, 0.0 }
 0x1c1   :  { %v601_v7 = vmax.f32 %v477_v3, 0.0 }
 0x1c2   :  { %v633_v8 = vpack.c.bf16 %v603_v5, %v602_v4 }
 0x1c3   :  { %v632_v9 = vpack.c.bf16 %v601_v7, %v600_v6  ;;  %v1704_v10 = vpop.f32.mrb[20].mxu1 }
 0x1c4   :  { %v498_v11 = vadd.f32 %v1704_v10, %v2208_v58  ;;  %v489_v12 = vpop.f32.mrb[21].mxu1 }
 0x1c5   :  { %v490_v13 = vadd.f32 %v2208_v58, %v489_v12  ;;  %v1705_v14 = vpop.f32.mrb[22].mxu1  ;;  %1746 = vmatprep.mubr.bf16.mxu0 %v632_v9 }
 0x1c6   :  { %v501_v15 = vadd.f32 %v1705_v14, %v2208_v58  ;;  %v492_v16 = vpop.f32.mrb[23].mxu1  ;;  %1747 = vmatmul.mubr.bf16.vlgmr.msra.gmra.mrb[16].mxu0 %v633_v8  ;;  %v606_v18 = vmax.f32 %v498_v11, 0.0 }
 0x1c7   :  { %v493_v17 = vadd.f32 %v2208_v58, %v492_v16  ;;  %v604_v20 = vmax.f32 %v490_v13, 0.0 }
 0x1c8   :  { %v607_v19 = vmax.f32 %v501_v15, 0.0 }
 0x1c9   :  { %v605_v21 = vmax.f32 %v493_v17, 0.0 }
 0x1ca   :  { %v635_v22 = vpack.c.bf16 %v607_v19, %v606_v18 }
 0x1cb   :  { %v634_v23 = vpack.c.bf16 %v605_v21, %v604_v20  ;;  %v1708_v24 = vpop.f32.mrb[24].mxu1 }
 0x1cc   :  { %v514_v25 = vadd.f32 %v1708_v24, %v2208_v58  ;;  %v505_v26 = vpop.f32.mrb[25].mxu1 }
 0x1cd   :  { %v506_v27 = vadd.f32 %v2208_v58, %v505_v26  ;;  %v1709_v29 = vpop.f32.mrb[26].mxu1  ;;  %1750 = vmatprep.mubr.bf16.mxu0 %v634_v23 }
 0x1ce   :  { %v517_v30 = vadd.f32 %v1709_v29, %v2208_v58  ;;  %v508_v32 = vpop.f32.mrb[27].mxu1  ;;  %1751 = vmatmul.mubr.bf16.gmra.mrb[20].mxu0 %v635_v22  ;;  %v610_v34 = vmax.f32 %v514_v25, 0.0 }
 0x1cf   :  { %v509_v33 = vadd.f32 %v2208_v58, %v508_v32  ;;  %v608_v36 = vmax.f32 %v506_v27, 0.0 }
 0x1d0   :  { %v611_v35 = vmax.f32 %v517_v30, 0.0 }
 0x1d1   :  { %v609_v37 = vmax.f32 %v509_v33, 0.0 }
 0x1d2   :  { %v637_v38 = vpack.c.bf16 %v611_v35, %v610_v34 }
 0x1d3   :  { %v636_v39 = vpack.c.bf16 %v609_v37, %v608_v36  ;;  %v1712_v40 = vpop.f32.mrb[28].mxu1 }
 0x1d4   :  { %v530_v41 = vadd.f32 %v1712_v40, %v2208_v58  ;;  %v521_v42 = vpop.f32.mrb[29].mxu1 }
 0x1d5   :  { %v522_v43 = vadd.f32 %v2208_v58, %v521_v42  ;;  %v1713_v44 = vpop.f32.mrb[30].mxu1  ;;  %1754 = vmatprep.mubr.bf16.mxu0 %v636_v39 }
 0x1d6   :  { %v533_v45 = vadd.f32 %v1713_v44, %v2208_v58  ;;  %v524_v46 = vpop.f32.mrb[31].mxu1  ;;  %1755 = vmatmul.mubr.bf16.gmra.mrb[24].mxu0 %v637_v38  ;;  %v614_v48 = vmax.f32 %v530_v41, 0.0 }
 0x1d7   :  { %v525_v47 = vadd.f32 %v2208_v58, %v524_v46  ;;  %v612_v50 = vmax.f32 %v522_v43, 0.0 }
 0x1d8   :  { %v615_v49 = vmax.f32 %v533_v45, 0.0 }
 0x1d9   :  { %v613_v51 = vmax.f32 %v525_v47, 0.0  ;;  %v1903_v47 = vld [vmem:[%s2513_s7 + $0x38] sm:$0xff]  }
 0x1da   :  { %v639_v0 = vpack.c.bf16 %v615_v49, %v614_v48  ;;  %1792 = vmatprep.subr.bf16.mxu1 %v1903_v47  ;;  %v1904_v48 = vld [vmem:[%s2515_s9] sm:$0xff]   ;;  %v1906_v49 = vld [vmem:[%s2515_s9 + $0x10] sm:$0xff]  }
 0x1db   :  { %v638_v52 = vpack.c.bf16 %v613_v51, %v612_v50  ;;  %v1716_v28 = vpop.f32.mrb[32].mxu1  ;;  %1793 = vmatpush3.bf16.msra.mxu1 %v1903_v47  ;;  %1826 = vmatprep.subr.bf16.mxu0 %v1904_v48  ;;  %v1907_v50 = vld [vmem:[%s2515_s9 + $0x18] sm:$0xff]   ;;  %v1908_v51 = vld [vmem:[%s2515_s9 + $0x20] sm:$0xff]  }
 0x1dc   :  { %v546_v31 = vadd.f32 %v1716_v28, %v2208_v58  ;;  %v537_v53 = vpop.f32.mrb[33].mxu1  ;;  %1827 = vmatpush3.bf16.msra.mxu0 %v1904_v48  ;;  %v2269_v28 = vld [vmem:[%s2516_s6] ss:$0 sm:$0xff] }
 0x1dd   :  { %v538_v54 = vadd.f32 %v2208_v58, %v537_v53  ;;  %v1717_v55 = vpop.f32.mrb[34].mxu1  ;;  %1758 = vmatprep.mubr.bf16.mxu0 %v638_v52  ;;  %v1910_v52 = vld [vmem:[%s2515_s9 + $0x30] sm:$0xff]  }
 0x1de   :  { %v549_v56 = vadd.f32 %v1717_v55, %v2208_v58  ;;  %v540_v57 = vpop.f32.mrb[35].mxu1  ;;  %1759 = vmatmul.mubr.bf16.gmra.mrb[28].mxu0 %v639_v0  ;;  %v618_v60 = vmax.f32 %v546_v31, 0.0  ;;  %v1909_v0 = vld [vmem:[%s2515_s9 + $0x28] sm:$0xff]  }
 0x1df   :  { %v541_v59 = vadd.f32 %v2208_v58, %v540_v57  ;;  %v616_v62 = vmax.f32 %v538_v54, 0.0 }
 0x1e0   :  { %v619_v61 = vmax.f32 %v549_v56, 0.0 }
 0x1e1   :  { %v617_v63 = vmax.f32 %v541_v59, 0.0 }
 0x1e2   :  { %v641_v1 = vpack.c.bf16 %v619_v61, %v618_v60 }
 0x1e3   :  { %v640_v2 = vpack.c.bf16 %v617_v63, %v616_v62  ;;  %v1720_v3 = vpop.f32.mrb[36].mxu1 }
 0x1e4   :  { %v562_v4 = vadd.f32 %v1720_v3, %v2208_v58  ;;  %v553_v5 = vpop.f32.mrb[37].mxu1 }
 0x1e5   :  { %v554_v6 = vadd.f32 %v2208_v58, %v553_v5  ;;  %v1721_v7 = vpop.f32.mrb[38].mxu1  ;;  %1762 = vmatprep.mubr.bf16.mxu0 %v640_v2 }
 0x1e6   :  { %v565_v8 = vadd.f32 %v1721_v7, %v2208_v58  ;;  %v556_v9 = vpop.f32.mrb[39].mxu1  ;;  %1763 = vmatmul.mubr.bf16.gmra.mrb[32].mxu0 %v641_v1  ;;  %v622_v11 = vmax.f32 %v562_v4, 0.0 }
 0x1e7   :  { %v557_v10 = vadd.f32 %v2208_v58, %v556_v9  ;;  %v620_v13 = vmax.f32 %v554_v6, 0.0 }
 0x1e8   :  { %v623_v12 = vmax.f32 %v565_v8, 0.0 }
 0x1e9   :  { %v621_v14 = vmax.f32 %v557_v10, 0.0 }
 0x1ea   :  { %v643_v15 = vpack.c.bf16 %v623_v12, %v622_v11 }
 0x1eb   :  { %v642_v16 = vpack.c.bf16 %v621_v14, %v620_v13  ;;  %v1724_v17 = vpop.f32.mrb[40].mxu1 }
 0x1ec   :  { %v578_v18 = vadd.f32 %v1724_v17, %v2208_v58  ;;  %v569_v19 = vpop.f32.mrb[41].mxu1 }
 0x1ed   :  { %v570_v20 = vadd.f32 %v2208_v58, %v569_v19  ;;  %v1725_v21 = vpop.f32.mrb[42].mxu1  ;;  %1766 = vmatprep.mubr.bf16.mxu0 %v642_v16 }
 0x1ee   :  { %v581_v22 = vadd.f32 %v1725_v21, %v2208_v58  ;;  %v572_v23 = vpop.f32.mrb[43].mxu1  ;;  %1767 = vmatmul.mubr.bf16.gmra.mrb[36].mxu0 %v643_v15  ;;  %v626_v25 = vmax.f32 %v578_v18, 0.0 }
 0x1ef   :  { %v573_v24 = vadd.f32 %v2208_v58, %v572_v23  ;;  %v624_v27 = vmax.f32 %v570_v20, 0.0 }
 0x1f0   :  { %v627_v26 = vmax.f32 %v581_v22, 0.0 }
 0x1f1   :  { %v625_v29 = vmax.f32 %v573_v24, 0.0 }
 0x1f2   :  { %v645_v30 = vpack.c.bf16 %v627_v26, %v626_v25 }
 0x1f3   :  { %v644_v32 = vpack.c.bf16 %v625_v29, %v624_v27  ;;  %v1728_v33 = vpop.f32.mrb[44].mxu1 }
 0x1f4   :  { %v594_v34 = vadd.f32 %v1728_v33, %v2208_v58  ;;  %v585_v35 = vpop.f32.mrb[45].mxu1 }
 0x1f5   :  { %v586_v36 = vadd.f32 %v2208_v58, %v585_v35  ;;  %v1729_v37 = vpop.f32.mrb[46].mxu1  ;;  %1770 = vmatprep.mubr.bf16.mxu0 %v644_v32 }
 0x1f6   :  { %v597_v38 = vadd.f32 %v1729_v37, %v2208_v58  ;;  %v588_v39 = vpop.f32.mrb[47].mxu1  ;;  %1771 = vmatmul.mubr.bf16.gmra.mrb[40].mxu0 %v645_v30  ;;  %v630_v41 = vmax.f32 %v594_v34, 0.0 }
 0x1f7   :  { %v589_v40 = vadd.f32 %v2208_v58, %v588_v39  ;;  %v628_v43 = vmax.f32 %v586_v36, 0.0  ;;  %v1905_v58 = vld [vmem:[%s2515_s9 + $0x8] sm:$0xff]  }
 0x1f8   :  { %v631_v42 = vmax.f32 %v597_v38, 0.0  ;;  %1828 = vmatprep.subr.bf16.mxu0 %v1905_v58 }
 0x1f9   :  { %v629_v44 = vmax.f32 %v589_v40, 0.0  ;;  %1829 = vmatpush3.bf16.msra.mxu0 %v1905_v58 }
 0x1fa   :  { %v647_v45 = vpack.c.bf16 %v631_v42, %v630_v41  ;;  %1830 = vmatprep.subr.bf16.mxu0 %v1906_v49 }
 0x1fb   :  { %v646_v46 = vpack.c.bf16 %v629_v44, %v628_v43 }
 0x1fd   :  { %1774 = vmatprep.mubr.bf16.mxu0 %v646_v46  ;;  %1831 = vmatpush3.bf16.msra.mxu0 %v1906_v49 }
 0x1fe   :  { %1775 = vmatmul.mubr.bf16.gmra.mrb[44].mxu0 %v647_v45  ;;  %1832 = vmatprep.subr.bf16.mxu0 %v1907_v50 }
 0x201   :  { %1833 = vmatpush3.bf16.msra.mxu0 %v1907_v50 }
 0x202   :  { %1834 = vmatprep.subr.bf16.mxu0 %v1908_v51 }
 0x205   :  { %1835 = vmatpush3.bf16.msra.mxu0 %v1908_v51 }
 0x206   :  { %1836 = vmatprep.subr.bf16.mxu0 %v1909_v0 }
 0x209   :  { %1837 = vmatpush3.bf16.msra.mxu0 %v1909_v0 }
 0x20a   :  { %1838 = vmatprep.subr.bf16.mxu0 %v1910_v52 }
 0x20d   :  { %1839 = vmatpush3.bf16.msra.mxu0 %v1910_v52 }
 0x299   :  { %v1748_v31 = vpop.f32.mrb[16].mxu0 }
 0x29a   :  { %v762_v53 = vadd.f32 %v1748_v31, %v2269_v28  ;;  %v753_v54 = vpop.f32.mrb[17].mxu0 }
 0x29b   :  { %v754_v55 = vadd.f32 %v2269_v28, %v753_v54  ;;  %v1749_v56 = vpop.f32.mrb[18].mxu0 }
 0x29c   :  { %v765_v57 = vadd.f32 %v1749_v56, %v2269_v28  ;;  %v756_v59 = vpop.f32.mrb[19].mxu0  ;;  %v882_v61 = vmax.f32 %v762_v53, 0.0 }
 0x29d   :  { %v757_v60 = vadd.f32 %v2269_v28, %v756_v59  ;;  %v880_v63 = vmax.f32 %v754_v55, 0.0 }
 0x29e   :  { %v883_v62 = vmax.f32 %v765_v57, 0.0 }
 0x29f   :  { %v881_v1 = vmax.f32 %v757_v60, 0.0 }
 0x2a0   :  { %v913_v2 = vpack.c.bf16 %v883_v62, %v882_v61 }
 0x2a1   :  { %v912_v3 = vpack.c.bf16 %v881_v1, %v880_v63  ;;  %v1752_v4 = vpop.f32.mrb[20].mxu0 }
 0x2a2   :  { %v778_v5 = vadd.f32 %v1752_v4, %v2269_v28  ;;  %v769_v6 = vpop.f32.mrb[21].mxu0 }
 0x2a3   :  { %v770_v7 = vadd.f32 %v2269_v28, %v769_v6  ;;  %v1753_v8 = vpop.f32.mrb[22].mxu0  ;;  %1794 = vmatprep.mubr.bf16.mxu1 %v912_v3 }
 0x2a4   :  { %v781_v9 = vadd.f32 %v1753_v8, %v2269_v28  ;;  %v772_v10 = vpop.f32.mrb[23].mxu0  ;;  %1795 = vmatmul.mubr.bf16.vlgmr.msra.gmra.mrb[48].mxu1 %v913_v2  ;;  %v886_v12 = vmax.f32 %v778_v5, 0.0 }
 0x2a5   :  { %v773_v11 = vadd.f32 %v2269_v28, %v772_v10  ;;  %v884_v14 = vmax.f32 %v770_v7, 0.0 }
 0x2a6   :  { %v887_v13 = vmax.f32 %v781_v9, 0.0 }
 0x2a7   :  { %v885_v15 = vmax.f32 %v773_v11, 0.0 }
 0x2a8   :  { %v915_v16 = vpack.c.bf16 %v887_v13, %v886_v12 }
 0x2a9   :  { %v914_v17 = vpack.c.bf16 %v885_v15, %v884_v14  ;;  %v1756_v18 = vpop.f32.mrb[24].mxu0 }
 0x2aa   :  { %v794_v19 = vadd.f32 %v1756_v18, %v2269_v28  ;;  %v785_v20 = vpop.f32.mrb[25].mxu0 }
 0x2ab   :  { %v786_v21 = vadd.f32 %v2269_v28, %v785_v20  ;;  %v1757_v22 = vpop.f32.mrb[26].mxu0  ;;  %1798 = vmatprep.mubr.bf16.mxu1 %v914_v17 }
 0x2ac   :  { %v797_v23 = vadd.f32 %v1757_v22, %v2269_v28  ;;  %v788_v24 = vpop.f32.mrb[27].mxu0  ;;  %1799 = vmatmul.mubr.bf16.gmra.mrb[52].mxu1 %v915_v16  ;;  %v890_v26 = vmax.f32 %v794_v19, 0.0 }
 0x2ad   :  { %v789_v25 = vadd.f32 %v2269_v28, %v788_v24  ;;  %v888_v29 = vmax.f32 %v786_v21, 0.0 }
 0x2ae   :  { %v891_v27 = vmax.f32 %v797_v23, 0.0 }
 0x2af   :  { %v889_v30 = vmax.f32 %v789_v25, 0.0 }
 0x2b0   :  { %v917_v32 = vpack.c.bf16 %v891_v27, %v890_v26 }
 0x2b1   :  { %v916_v33 = vpack.c.bf16 %v889_v30, %v888_v29  ;;  %v1760_v34 = vpop.f32.mrb[28].mxu0 }
 0x2b2   :  { %v810_v35 = vadd.f32 %v1760_v34, %v2269_v28  ;;  %v801_v36 = vpop.f32.mrb[29].mxu0 }
 0x2b3   :  { %v802_v37 = vadd.f32 %v2269_v28, %v801_v36  ;;  %v1761_v38 = vpop.f32.mrb[30].mxu0  ;;  %1802 = vmatprep.mubr.bf16.mxu1 %v916_v33 }
 0x2b4   :  { %v813_v39 = vadd.f32 %v1761_v38, %v2269_v28  ;;  %v804_v40 = vpop.f32.mrb[31].mxu0  ;;  %1803 = vmatmul.mubr.bf16.gmra.mrb[56].mxu1 %v917_v32  ;;  %v894_v42 = vmax.f32 %v810_v35, 0.0 }
 0x2b5   :  { %v805_v41 = vadd.f32 %v2269_v28, %v804_v40  ;;  %v892_v44 = vmax.f32 %v802_v37, 0.0 }
 0x2b6   :  { %v895_v43 = vmax.f32 %v813_v39, 0.0 }
 0x2b7   :  { %v893_v45 = vmax.f32 %v805_v41, 0.0  ;;  %v1911_v41 = vld [vmem:[%s2515_s9 + $0x38] sm:$0xff]  }
 0x2b8   :  { %v919_v46 = vpack.c.bf16 %v895_v43, %v894_v42  ;;  %1840 = vmatprep.subr.bf16.mxu0 %v1911_v41  ;;  %v2309_v42 = vld [vmem:[%s2517_s8] ss:$0 sm:$0xff] }
 0x2b9   :  { %v918_v47 = vpack.c.bf16 %v893_v45, %v892_v44  ;;  %v1764_v48 = vpop.f32.mrb[32].mxu0  ;;  %1841 = vmatpush3.bf16.msra.mxu0 %v1911_v41 }
 0x2ba   :  { %v826_v58 = vadd.f32 %v1764_v48, %v2269_v28  ;;  %v817_v49 = vpop.f32.mrb[33].mxu0 }
 0x2bb   :  { %v818_v50 = vadd.f32 %v2269_v28, %v817_v49  ;;  %v1765_v51 = vpop.f32.mrb[34].mxu0  ;;  %1806 = vmatprep.mubr.bf16.mxu1 %v918_v47 }
 0x2bc   :  { %v829_v0 = vadd.f32 %v1765_v51, %v2269_v28  ;;  %v820_v52 = vpop.f32.mrb[35].mxu0  ;;  %1807 = vmatmul.mubr.bf16.gmra.mrb[60].mxu1 %v919_v46  ;;  %v898_v53 = vmax.f32 %v826_v58, 0.0 }
 0x2bd   :  { %v821_v31 = vadd.f32 %v2269_v28, %v820_v52  ;;  %v896_v55 = vmax.f32 %v818_v50, 0.0 }
 0x2be   :  { %v899_v54 = vmax.f32 %v829_v0, 0.0 }
 0x2bf   :  { %v897_v56 = vmax.f32 %v821_v31, 0.0 }
 0x2c0   :  { %v921_v57 = vpack.c.bf16 %v899_v54, %v898_v53 }
 0x2c1   :  { %v920_v59 = vpack.c.bf16 %v897_v56, %v896_v55  ;;  %v1768_v60 = vpop.f32.mrb[36].mxu0 }
 0x2c2   :  { %v842_v61 = vadd.f32 %v1768_v60, %v2269_v28  ;;  %v833_v62 = vpop.f32.mrb[37].mxu0 }
 0x2c3   :  { %v834_v63 = vadd.f32 %v2269_v28, %v833_v62  ;;  %v1769_v1 = vpop.f32.mrb[38].mxu0  ;;  %1810 = vmatprep.mubr.bf16.mxu1 %v920_v59 }
 0x2c4   :  { %v845_v2 = vadd.f32 %v1769_v1, %v2269_v28  ;;  %v836_v3 = vpop.f32.mrb[39].mxu0  ;;  %1811 = vmatmul.mubr.bf16.gmra.mrb[64].mxu1 %v921_v57  ;;  %v902_v5 = vmax.f32 %v842_v61, 0.0 }
 0x2c5   :  { %v837_v4 = vadd.f32 %v2269_v28, %v836_v3  ;;  %v900_v7 = vmax.f32 %v834_v63, 0.0 }
 0x2c6   :  { %v903_v6 = vmax.f32 %v845_v2, 0.0 }
 0x2c7   :  { %v901_v8 = vmax.f32 %v837_v4, 0.0 }
 0x2c8   :  { %v923_v9 = vpack.c.bf16 %v903_v6, %v902_v5 }
 0x2c9   :  { %v922_v10 = vpack.c.bf16 %v901_v8, %v900_v7  ;;  %v1772_v11 = vpop.f32.mrb[40].mxu0 }
 0x2ca   :  { %v858_v12 = vadd.f32 %v1772_v11, %v2269_v28  ;;  %v849_v13 = vpop.f32.mrb[41].mxu0 }
 0x2cb   :  { %v850_v14 = vadd.f32 %v2269_v28, %v849_v13  ;;  %v1773_v15 = vpop.f32.mrb[42].mxu0  ;;  %1814 = vmatprep.mubr.bf16.mxu1 %v922_v10 }
 0x2cc   :  { %v861_v16 = vadd.f32 %v1773_v15, %v2269_v28  ;;  %v852_v17 = vpop.f32.mrb[43].mxu0  ;;  %1815 = vmatmul.mubr.bf16.gmra.mrb[68].mxu1 %v923_v9  ;;  %v906_v19 = vmax.f32 %v858_v12, 0.0 }
 0x2cd   :  { %v853_v18 = vadd.f32 %v2269_v28, %v852_v17  ;;  %v904_v21 = vmax.f32 %v850_v14, 0.0 }
 0x2ce   :  { %v907_v20 = vmax.f32 %v861_v16, 0.0 }
 0x2cf   :  { %v905_v22 = vmax.f32 %v853_v18, 0.0 }
 0x2d0   :  { %v925_v23 = vpack.c.bf16 %v907_v20, %v906_v19 }
 0x2d1   :  { %v924_v24 = vpack.c.bf16 %v905_v22, %v904_v21  ;;  %v1776_v25 = vpop.f32.mrb[44].mxu0 }
 0x2d2   :  { %v874_v26 = vadd.f32 %v1776_v25, %v2269_v28  ;;  %v865_v27 = vpop.f32.mrb[45].mxu0 }
 0x2d3   :  { %v866_v29 = vadd.f32 %v2269_v28, %v865_v27  ;;  %v1777_v30 = vpop.f32.mrb[46].mxu0  ;;  %1818 = vmatprep.mubr.bf16.mxu1 %v924_v24 }
 0x2d4   :  { %v877_v32 = vadd.f32 %v1777_v30, %v2269_v28  ;;  %v868_v33 = vpop.f32.mrb[47].mxu0  ;;  %1819 = vmatmul.mubr.bf16.gmra.mrb[72].mxu1 %v925_v23  ;;  %v910_v35 = vmax.f32 %v874_v26, 0.0 }
 0x2d5   :  { %v869_v34 = vadd.f32 %v2269_v28, %v868_v33  ;;  %v908_v37 = vmax.f32 %v866_v29, 0.0 }
 0x2d6   :  { %v911_v36 = vmax.f32 %v877_v32, 0.0 }
 0x2d7   :  { %v909_v38 = vmax.f32 %v869_v34, 0.0 }
 0x2d8   :  { %v927_v39 = vpack.c.bf16 %v911_v36, %v910_v35 }
 0x2d9   :  { %v926_v40 = vpack.c.bf16 %v909_v38, %v908_v37 }
 0x2db   :  { %1822 = vmatprep.mubr.bf16.mxu1 %v926_v40 }
 0x2dc   :  { %1823 = vmatmul.mubr.bf16.gmra.mrb[76].mxu1 %v927_v39 }
 0x377   :  { %v1796_v28 = vpop.f32.mrb[48].mxu1 }
 0x378   :  { %v1042_v43 = vadd.f32 %v1796_v28, %v2309_v42  ;;  %v1033_v44 = vpop.f32.mrb[49].mxu1 }
 0x379   :  { %v1034_v45 = vadd.f32 %v2309_v42, %v1033_v44  ;;  %v1797_v46 = vpop.f32.mrb[50].mxu1 }
 0x37a   :  { %v1045_v47 = vadd.f32 %v1797_v46, %v2309_v42  ;;  %v1036_v48 = vpop.f32.mrb[51].mxu1  ;;  %v1162_v49 = vmax.f32 %v1042_v43, 0.0 }
 0x37b   :  { %v1037_v58 = vadd.f32 %v2309_v42, %v1036_v48  ;;  %v1160_v51 = vmax.f32 %v1034_v45, 0.0 }
 0x37c   :  { %v1163_v50 = vmax.f32 %v1045_v47, 0.0 }
 0x37d   :  { %v1161_v0 = vmax.f32 %v1037_v58, 0.0 }
 0x37e   :  { %v1193_v52 = vpack.c.bf16 %v1163_v50, %v1162_v49 }
 0x37f   :  { %v1192_v31 = vpack.c.bf16 %v1161_v0, %v1160_v51  ;;  %v1800_v53 = vpop.f32.mrb[52].mxu1 }
 0x380   :  { %v1058_v54 = vadd.f32 %v1800_v53, %v2309_v42  ;;  %v1049_v55 = vpop.f32.mrb[53].mxu1 }
 0x381   :  { %v1050_v56 = vadd.f32 %v2309_v42, %v1049_v55  ;;  %v1801_v57 = vpop.f32.mrb[54].mxu1  ;;  %1842 = vmatprep.mubr.bf16.mxu0 %v1192_v31 }
 0x382   :  { %v1061_v59 = vadd.f32 %v1801_v57, %v2309_v42  ;;  %v1052_v60 = vpop.f32.mrb[55].mxu1  ;;  %1843 = vmatmul.mubr.bf16.vlgmr.msra.gmra.mrb[48].mxu0 %v1193_v52  ;;  %v1166_v62 = vmax.f32 %v1058_v54, 0.0 }
 0x383   :  { %v1053_v61 = vadd.f32 %v2309_v42, %v1052_v60  ;;  %v1164_v1 = vmax.f32 %v1050_v56, 0.0 }
 0x384   :  { %v1167_v63 = vmax.f32 %v1061_v59, 0.0 }
 0x385   :  { %v1165_v2 = vmax.f32 %v1053_v61, 0.0 }
 0x386   :  { %v1195_v3 = vpack.c.bf16 %v1167_v63, %v1166_v62 }
 0x387   :  { %v1194_v4 = vpack.c.bf16 %v1165_v2, %v1164_v1  ;;  %v1804_v5 = vpop.f32.mrb[56].mxu1 }
 0x388   :  { %v1074_v6 = vadd.f32 %v1804_v5, %v2309_v42  ;;  %v1065_v7 = vpop.f32.mrb[57].mxu1 }
 0x389   :  { %v1066_v8 = vadd.f32 %v2309_v42, %v1065_v7  ;;  %v1805_v9 = vpop.f32.mrb[58].mxu1  ;;  %1846 = vmatprep.mubr.bf16.mxu0 %v1194_v4 }
 0x38a   :  { %v1077_v10 = vadd.f32 %v1805_v9, %v2309_v42  ;;  %v1068_v11 = vpop.f32.mrb[59].mxu1  ;;  %1847 = vmatmul.mubr.bf16.gmra.mrb[52].mxu0 %v1195_v3  ;;  %v1170_v13 = vmax.f32 %v1074_v6, 0.0 }
 0x38b   :  { %v1069_v12 = vadd.f32 %v2309_v42, %v1068_v11  ;;  %v1168_v15 = vmax.f32 %v1066_v8, 0.0 }
 0x38c   :  { %v1171_v14 = vmax.f32 %v1077_v10, 0.0 }
 0x38d   :  { %v1169_v16 = vmax.f32 %v1069_v12, 0.0 }
 0x38e   :  { %v1197_v17 = vpack.c.bf16 %v1171_v14, %v1170_v13 }
 0x38f   :  { %v1196_v18 = vpack.c.bf16 %v1169_v16, %v1168_v15  ;;  %v1808_v19 = vpop.f32.mrb[60].mxu1 }
 0x390   :  { %v1090_v20 = vadd.f32 %v1808_v19, %v2309_v42  ;;  %v1081_v21 = vpop.f32.mrb[61].mxu1 }
 0x391   :  { %v1082_v22 = vadd.f32 %v2309_v42, %v1081_v21  ;;  %v1809_v23 = vpop.f32.mrb[62].mxu1  ;;  %1850 = vmatprep.mubr.bf16.mxu0 %v1196_v18 }
 0x392   :  { %v1093_v24 = vadd.f32 %v1809_v23, %v2309_v42  ;;  %v1084_v25 = vpop.f32.mrb[63].mxu1  ;;  %1851 = vmatmul.mubr.bf16.gmra.mrb[56].mxu0 %v1197_v17  ;;  %v1174_v27 = vmax.f32 %v1090_v20, 0.0 }
 0x393   :  { %v1085_v26 = vadd.f32 %v2309_v42, %v1084_v25  ;;  %v1172_v30 = vmax.f32 %v1082_v22, 0.0 }
 0x394   :  { %v1175_v29 = vmax.f32 %v1093_v24, 0.0 }
 0x395   :  { %v1173_v32 = vmax.f32 %v1085_v26, 0.0  ;;  %v2346_v26 = vld [vmem:[%s2518_s10] ss:$0 sm:$0xff] }
 0x396   :  { %v1199_v33 = vpack.c.bf16 %v1175_v29, %v1174_v27 }
 0x397   :  { %v1198_v34 = vpack.c.bf16 %v1173_v32, %v1172_v30  ;;  %v1812_v35 = vpop.f32.mrb[64].mxu1 }
 0x398   :  { %v1106_v36 = vadd.f32 %v1812_v35, %v2309_v42  ;;  %v1097_v37 = vpop.f32.mrb[65].mxu1 }
 0x399   :  { %v1098_v38 = vadd.f32 %v2309_v42, %v1097_v37  ;;  %v1813_v39 = vpop.f32.mrb[66].mxu1  ;;  %1854 = vmatprep.mubr.bf16.mxu0 %v1198_v34 }
 0x39a   :  { %v1109_v40 = vadd.f32 %v1813_v39, %v2309_v42  ;;  %v1100_v41 = vpop.f32.mrb[67].mxu1  ;;  %1855 = vmatmul.mubr.bf16.gmra.mrb[60].mxu0 %v1199_v33  ;;  %v1178_v43 = vmax.f32 %v1106_v36, 0.0 }
 0x39b   :  { %v1101_v28 = vadd.f32 %v2309_v42, %v1100_v41  ;;  %v1176_v45 = vmax.f32 %v1098_v38, 0.0 }
 0x39c   :  { %v1179_v44 = vmax.f32 %v1109_v40, 0.0 }
 0x39d   :  { %v1177_v46 = vmax.f32 %v1101_v28, 0.0 }
 0x39e   :  { %v1201_v47 = vpack.c.bf16 %v1179_v44, %v1178_v43 }
 0x39f   :  { %v1200_v48 = vpack.c.bf16 %v1177_v46, %v1176_v45  ;;  %v1816_v58 = vpop.f32.mrb[68].mxu1 }
 0x3a0   :  { %v1122_v49 = vadd.f32 %v1816_v58, %v2309_v42  ;;  %v1113_v50 = vpop.f32.mrb[69].mxu1 }
 0x3a1   :  { %v1114_v51 = vadd.f32 %v2309_v42, %v1113_v50  ;;  %v1817_v0 = vpop.f32.mrb[70].mxu1  ;;  %1858 = vmatprep.mubr.bf16.mxu0 %v1200_v48 }
 0x3a2   :  { %v1125_v52 = vadd.f32 %v1817_v0, %v2309_v42  ;;  %v1116_v31 = vpop.f32.mrb[71].mxu1  ;;  %1859 = vmatmul.mubr.bf16.gmra.mrb[64].mxu0 %v1201_v47  ;;  %v1182_v54 = vmax.f32 %v1122_v49, 0.0 }
 0x3a3   :  { %v1117_v53 = vadd.f32 %v2309_v42, %v1116_v31  ;;  %v1180_v56 = vmax.f32 %v1114_v51, 0.0 }
 0x3a4   :  { %v1183_v55 = vmax.f32 %v1125_v52, 0.0 }
 0x3a5   :  { %v1181_v57 = vmax.f32 %v1117_v53, 0.0 }
 0x3a6   :  { %v1203_v59 = vpack.c.bf16 %v1183_v55, %v1182_v54 }
 0x3a7   :  { %v1202_v60 = vpack.c.bf16 %v1181_v57, %v1180_v56  ;;  %v1820_v61 = vpop.f32.mrb[72].mxu1 }
 0x3a8   :  { %v1138_v62 = vadd.f32 %v1820_v61, %v2309_v42  ;;  %v1129_v63 = vpop.f32.mrb[73].mxu1 }
 0x3a9   :  { %v1130_v1 = vadd.f32 %v2309_v42, %v1129_v63  ;;  %v1821_v2 = vpop.f32.mrb[74].mxu1  ;;  %1862 = vmatprep.mubr.bf16.mxu0 %v1202_v60 }
 0x3aa   :  { %v1141_v3 = vadd.f32 %v1821_v2, %v2309_v42  ;;  %v1132_v4 = vpop.f32.mrb[75].mxu1  ;;  %1863 = vmatmul.mubr.bf16.gmra.mrb[68].mxu0 %v1203_v59  ;;  %v1186_v6 = vmax.f32 %v1138_v62, 0.0 }
 0x3ab   :  { %v1133_v5 = vadd.f32 %v2309_v42, %v1132_v4  ;;  %v1184_v8 = vmax.f32 %v1130_v1, 0.0 }
 0x3ac   :  { %v1187_v7 = vmax.f32 %v1141_v3, 0.0 }
 0x3ad   :  { %v1185_v9 = vmax.f32 %v1133_v5, 0.0 }
 0x3ae   :  { %v1205_v10 = vpack.c.bf16 %v1187_v7, %v1186_v6 }
 0x3af   :  { %v1204_v11 = vpack.c.bf16 %v1185_v9, %v1184_v8  ;;  %v1824_v12 = vpop.f32.mrb[76].mxu1 }
 0x3b0   :  { %v1154_v13 = vadd.f32 %v1824_v12, %v2309_v42  ;;  %v1145_v14 = vpop.f32.mrb[77].mxu1 }
 0x3b1   :  { %v1146_v15 = vadd.f32 %v2309_v42, %v1145_v14  ;;  %v1825_v16 = vpop.f32.mrb[78].mxu1  ;;  %1866 = vmatprep.mubr.bf16.mxu0 %v1204_v11 }
 0x3b2   :  { %v1157_v17 = vadd.f32 %v1825_v16, %v2309_v42  ;;  %v1148_v18 = vpop.f32.mrb[79].mxu1  ;;  %1867 = vmatmul.mubr.bf16.gmra.mrb[72].mxu0 %v1205_v10  ;;  %v1190_v20 = vmax.f32 %v1154_v13, 0.0 }
 0x3b3   :  { %v1149_v19 = vadd.f32 %v2309_v42, %v1148_v18  ;;  %v1188_v22 = vmax.f32 %v1146_v15, 0.0 }
 0x3b4   :  { %v1191_v21 = vmax.f32 %v1157_v17, 0.0 }
 0x3b5   :  { %v1189_v23 = vmax.f32 %v1149_v19, 0.0 }
 0x3b6   :  { %v1207_v24 = vpack.c.bf16 %v1191_v21, %v1190_v20 }
 0x3b7   :  { %v1206_v25 = vpack.c.bf16 %v1189_v23, %v1188_v22 }
 0x3b9   :  { %1870 = vmatprep.mubr.bf16.mxu0 %v1206_v25 }
 0x3ba   :  { %1871 = vmatmul.mubr.bf16.gmra.mrb[76].mxu0 %v1207_v24 }
 0x455   :  { %v1844_v27 = vpop.f32.mrb[48].mxu0 }
 0x456   :  { %v1322_v29 = vadd.f32 %v1844_v27, %v2346_v26  ;;  %v1313_v30 = vpop.f32.mrb[49].mxu0 }
 0x457   :  { %v1314_v42 = vadd.f32 %v2346_v26, %v1313_v30  ;;  %v1845_v32 = vpop.f32.mrb[50].mxu0 }
 0x458   :  { %1443 = vst.msk [vmem:[%s2519_s11 + $0x10] sm:$0xff] %vm1440_vm1, %v1322_v29  ;;  %v1325_v33 = vadd.f32 %v1845_v32, %v2346_v26  ;;  %v1316_v34 = vpop.f32.mrb[51].mxu0 }
 0x459   :  { %1441 = vst.msk [vmem:[%s2519_s11] sm:$0xff] %vm1440_vm1, %v1314_v42  ;;  %v1317_v35 = vadd.f32 %v2346_v26, %v1316_v34 }
 0x45a   :  { %1444 = vst.msk [vmem:[%s2519_s11 + $0x18] sm:$0xff] %vm1440_vm1, %v1325_v33 }
 0x45b   :  { %1442 = vst.msk [vmem:[%s2519_s11 + $0x8] sm:$0xff] %vm1440_vm1, %v1317_v35 }
 0x45d   :  { %v1848_v36 = vpop.f32.mrb[52].mxu0 }
 0x45e   :  { %v1338_v37 = vadd.f32 %v1848_v36, %v2346_v26  ;;  %v1329_v38 = vpop.f32.mrb[53].mxu0 }
 0x45f   :  { %v1330_v39 = vadd.f32 %v2346_v26, %v1329_v38  ;;  %v1849_v40 = vpop.f32.mrb[54].mxu0 }
 0x460   :  { %1447 = vst.msk [vmem:[%s2519_s11 + $0x30] sm:$0xff] %vm1440_vm1, %v1338_v37  ;;  %v1341_v41 = vadd.f32 %v1849_v40, %v2346_v26  ;;  %v1332_v28 = vpop.f32.mrb[55].mxu0 }
 0x461   :  { %1445 = vst.msk [vmem:[%s2519_s11 + $0x20] sm:$0xff] %vm1440_vm1, %v1330_v39  ;;  %v1333_v43 = vadd.f32 %v2346_v26, %v1332_v28 }
 0x462   :  { %1448 = vst.msk [vmem:[%s2519_s11 + $0x38] sm:$0xff] %vm1440_vm1, %v1341_v41 }
 0x463   :  { %1446 = vst.msk [vmem:[%s2519_s11 + $0x28] sm:$0xff] %vm1440_vm1, %v1333_v43 }
 0x465   :  { %v1852_v44 = vpop.f32.mrb[56].mxu0 }
 0x466   :  { %v1354_v45 = vadd.f32 %v1852_v44, %v2346_v26  ;;  %v1345_v46 = vpop.f32.mrb[57].mxu0 }
 0x467   :  { %v1346_v47 = vadd.f32 %v2346_v26, %v1345_v46  ;;  %v1853_v48 = vpop.f32.mrb[58].mxu0 }
 0x468   :  { %1451 = vst.msk [vmem:[%s2519_s11 + $0x50] sm:$0xff] %vm1440_vm1, %v1354_v45  ;;  %v1357_v58 = vadd.f32 %v1853_v48, %v2346_v26  ;;  %v1348_v49 = vpop.f32.mrb[59].mxu0 }
 0x469   :  { %1449 = vst.msk [vmem:[%s2519_s11 + $0x40] sm:$0xff] %vm1440_vm1, %v1346_v47  ;;  %v1349_v50 = vadd.f32 %v2346_v26, %v1348_v49 }
 0x46a   :  { %1452 = vst.msk [vmem:[%s2519_s11 + $0x58] sm:$0xff] %vm1440_vm1, %v1357_v58 }
 0x46b   :  { %1450 = vst.msk [vmem:[%s2519_s11 + $0x48] sm:$0xff] %vm1440_vm1, %v1349_v50 }
 0x46d   :  { %v1856_v51 = vpop.f32.mrb[60].mxu0 }
 0x46e   :  { %v1370_v0 = vadd.f32 %v1856_v51, %v2346_v26  ;;  %v1361_v52 = vpop.f32.mrb[61].mxu0 }
 0x46f   :  { %v1362_v31 = vadd.f32 %v2346_v26, %v1361_v52  ;;  %v1857_v53 = vpop.f32.mrb[62].mxu0 }
 0x470   :  { %1455 = vst.msk [vmem:[%s2519_s11 + $0x70] sm:$0xff] %vm1440_vm1, %v1370_v0  ;;  %v1373_v54 = vadd.f32 %v1857_v53, %v2346_v26  ;;  %v1364_v55 = vpop.f32.mrb[63].mxu0 }
 0x471   :  { %1453 = vst.msk [vmem:[%s2519_s11 + $0x60] sm:$0xff] %vm1440_vm1, %v1362_v31  ;;  %v1365_v56 = vadd.f32 %v2346_v26, %v1364_v55 }
 0x472   :  { %1456 = vst.msk [vmem:[%s2519_s11 + $0x78] sm:$0xff] %vm1440_vm1, %v1373_v54 }
 0x473   :  { %1454 = vst.msk [vmem:[%s2519_s11 + $0x68] sm:$0xff] %vm1440_vm1, %v1365_v56 }
 0x475   :  { %v1860_v57 = vpop.f32.mrb[64].mxu0 }
 0x476   :  { %v1386_v59 = vadd.f32 %v1860_v57, %v2346_v26  ;;  %v1377_v60 = vpop.f32.mrb[65].mxu0 }
 0x477   :  { %v1378_v61 = vadd.f32 %v2346_v26, %v1377_v60  ;;  %v1861_v62 = vpop.f32.mrb[66].mxu0 }
 0x478   :  { %1459 = vst.msk [vmem:[%s2519_s11 + $0x90] sm:$0xff] %vm1440_vm1, %v1386_v59  ;;  %v1389_v63 = vadd.f32 %v1861_v62, %v2346_v26  ;;  %v1380_v1 = vpop.f32.mrb[67].mxu0 }
 0x479   :  { %1457 = vst.msk [vmem:[%s2519_s11 + $0x80] sm:$0xff] %vm1440_vm1, %v1378_v61  ;;  %v1381_v2 = vadd.f32 %v2346_v26, %v1380_v1 }
 0x47a   :  { %1460 = vst.msk [vmem:[%s2519_s11 + $0x98] sm:$0xff] %vm1440_vm1, %v1389_v63 }
 0x47b   :  { %1458 = vst.msk [vmem:[%s2519_s11 + $0x88] sm:$0xff] %vm1440_vm1, %v1381_v2 }
 0x47d   :  { %v1864_v3 = vpop.f32.mrb[68].mxu0 }
 0x47e   :  { %v1402_v4 = vadd.f32 %v1864_v3, %v2346_v26  ;;  %v1393_v5 = vpop.f32.mrb[69].mxu0 }
 0x47f   :  { %v1394_v6 = vadd.f32 %v2346_v26, %v1393_v5  ;;  %v1865_v7 = vpop.f32.mrb[70].mxu0 }
 0x480   :  { %1463 = vst.msk [vmem:[%s2519_s11 + $0xb0] sm:$0xff] %vm1440_vm1, %v1402_v4  ;;  %v1405_v8 = vadd.f32 %v1865_v7, %v2346_v26  ;;  %v1396_v9 = vpop.f32.mrb[71].mxu0 }
 0x481   :  { %1461 = vst.msk [vmem:[%s2519_s11 + $0xa0] sm:$0xff] %vm1440_vm1, %v1394_v6  ;;  %v1397_v10 = vadd.f32 %v2346_v26, %v1396_v9 }
 0x482   :  { %1464 = vst.msk [vmem:[%s2519_s11 + $0xb8] sm:$0xff] %vm1440_vm1, %v1405_v8 }
 0x483   :  { %1462 = vst.msk [vmem:[%s2519_s11 + $0xa8] sm:$0xff] %vm1440_vm1, %v1397_v10 }
 0x485   :  { %v1868_v11 = vpop.f32.mrb[72].mxu0 }
 0x486   :  { %v1418_v12 = vadd.f32 %v1868_v11, %v2346_v26  ;;  %v1409_v13 = vpop.f32.mrb[73].mxu0 }
 0x487   :  { %v1410_v14 = vadd.f32 %v2346_v26, %v1409_v13  ;;  %v1869_v15 = vpop.f32.mrb[74].mxu0 }
 0x488   :  { %1467 = vst.msk [vmem:[%s2519_s11 + $0xd0] sm:$0xff] %vm1440_vm1, %v1418_v12  ;;  %v1421_v16 = vadd.f32 %v1869_v15, %v2346_v26  ;;  %v1412_v17 = vpop.f32.mrb[75].mxu0 }
 0x489   :  { %1465 = vst.msk [vmem:[%s2519_s11 + $0xc0] sm:$0xff] %vm1440_vm1, %v1410_v14  ;;  %v1413_v18 = vadd.f32 %v2346_v26, %v1412_v17 }
 0x48a   :  { %1468 = vst.msk [vmem:[%s2519_s11 + $0xd8] sm:$0xff] %vm1440_vm1, %v1421_v16 }
 0x48b   :  { %1466 = vst.msk [vmem:[%s2519_s11 + $0xc8] sm:$0xff] %vm1440_vm1, %v1413_v18 }
 0x48d   :  { %v1872_v19 = vpop.f32.mrb[76].mxu0 }
 0x48e   :  { %v1434_v20 = vadd.f32 %v1872_v19, %v2346_v26  ;;  %v1425_v21 = vpop.f32.mrb[77].mxu0 }
 0x48f   :  { %v1426_v22 = vadd.f32 %v2346_v26, %v1425_v21  ;;  %v1873_v23 = vpop.f32.mrb[78].mxu0 }
 0x490   :  { %1471 = vst.msk [vmem:[%s2519_s11 + $0xf0] sm:$0xff] %vm1440_vm1, %v1434_v20  ;;  %v1437_v24 = vadd.f32 %v1873_v23, %v2346_v26  ;;  %v1428_v25 = vpop.f32.mrb[79].mxu0 }
 0x491   :  { %1469 = vst.msk [vmem:[%s2519_s11 + $0xe0] sm:$0xff] %vm1440_vm1, %v1426_v22  ;;  %v1429_v27 = vadd.f32 %v2346_v26, %v1428_v25 }
 0x492   :  { %1472 = vst.msk [vmem:[%s2519_s11 + $0xf8] sm:$0xff] %vm1440_vm1, %v1437_v24 }
 0x493   :  { %1470 = vst.msk [vmem:[%s2519_s11 + $0xe8] sm:$0xff] %vm1440_vm1, %v1429_v27 }

</bundles_post_ra>
